<compile_context>
chip_gen: v7x
topology: tpu7x:2x2x1
jax: 0.10.0
libtpu: 0.0.40
codegen_flags: <defaults>
</compile_context>

<pallas_src>
import jax
import jax.numpy as jnp
from jax.experimental import pallas as pl
from jax.experimental.pallas import tpu as pltpu


def _vmem_spec():
    return pl.BlockSpec(memory_space=pltpu.MemorySpace.VMEM)


def readout_kernel(h_ref, w_ref, out_ref):
    """Fused readout: mean-pool -> W -> tanh -> sigmoid gate -> gated sum."""
    h = h_ref[...]                                            # (N, D) f32
    n = h.shape[0]

    # torch.mean(h, dim=0) @ W   (sublane reduction + one MXU pass)
    mean_h = jnp.sum(h, axis=0, keepdims=True) * (1.0 / n)    # (1, D)
    global_h = jnp.dot(mean_h, w_ref[...],
                       preferred_element_type=jnp.float32)    # (1, D)

    # tanh on the EUP
    tg = jnp.tanh(global_h)                                   # (1, D)

    # sigmoid(h @ tg) without materializing tg as a column vector:
    # row-wise dot via broadcast-multiply + lane reduction (XLU).
    scores = jnp.sum(h * tg, axis=1, keepdims=True)           # (N, 1)
    sig = 1.0 / (1.0 + jnp.exp(-scores))                      # (N, 1)

    # sum over nodes of sigmoid-gated rows -> (1, D)
    out_ref[...] = jnp.sum(sig * h, axis=0, keepdims=True)


def readout_forward(h, weight):
    n, d = h.shape
    bytes_accessed = (n * d + d * d + d) * 4
    cost = pl.CostEstimate(flops=2 * d * d + 6 * n * d,
                           transcendentals=d + n,
                           bytes_accessed=bytes_accessed)
    return pl.pallas_call(
        readout_kernel,
        out_shape=jax.ShapeDtypeStruct((1, d), jnp.float32),
        in_specs=[_vmem_spec(), _vmem_spec()],
        out_specs=_vmem_spec(),
        compiler_params=pltpu.CompilerParams(vmem_limit_bytes=4 << 20),
        cost_estimate=cost,
    )(h, weight)


def reference_forward(h, weight):
    """Pure-JAX mirror of the PyTorch readout.forward."""
    global_h = jnp.mean(h, axis=0) @ weight
    transformed_global = jnp.tanh(global_h)
    sigmoid_scores = jax.nn.sigmoid((h @ transformed_global.reshape(-1, 1)).sum(axis=1))
    h_global = sigmoid_scores[:, None] * h
    return h_global.sum(axis=0)[None, :]


if __name__ == "__main__":
    N = 16          # number of graph nodes
    D = 128         # output_size; multiple of 128 -> lane-dense output row

    key = jax.random.PRNGKey(0)
    kh, kw = jax.random.split(key)

    h = jax.random.normal(kh, (N, D), jnp.float32)

    # xavier_uniform-like init for the (D, D) weight
    # TODO(synk): does not bit-match torch.nn.init.xavier_uniform_ RNG stream.
    limit = (6.0 / (D + D)) ** 0.5
    weight = jax.random.uniform(kw, (D, D), jnp.float32, -limit, limit)

    out = jax.block_until_ready(readout_forward(h, weight))
    ref = reference_forward(h, weight)

    assert out.shape == (1, D), out.shape
    assert jnp.allclose(out, ref, rtol=1e-5, atol=1e-5), (out, ref)

    print("KERNEL_OK")
</pallas_src>

<mosaic_0001>
module attributes {stable_mosaic.version = 11 : i64} {
  func.func @readout_kernel(%arg0: memref<16x128xf32, #tpu.memory_space<vmem>>, %arg1: memref<128x128xf32, #tpu.memory_space<vmem>>, %arg2: memref<1x128xf32, #tpu.memory_space<vmem>>) attributes {dimension_semantics = [], scalar_prefetch = 0 : i64, scratch_operands = 0 : i64, tpu.core_type = #tpu.core_type<tc>} {
    %c0 = arith.constant 0 : index
    %c0_0 = arith.constant 0 : index
    %0 = vector.load %arg0[%c0, %c0_0] : memref<16x128xf32, #tpu.memory_space<vmem>>, vector<16x128xf32>
    %cst = arith.constant dense<0.000000e+00> : vector<128xf32>
    %1 = vector.multi_reduction <add>, %0, %cst [0] : vector<16x128xf32> to vector<128xf32>
    %2 = vector.shape_cast %1 : vector<128xf32> to vector<1x128xf32>
    %cst_1 = arith.constant 6.250000e-02 : f32
    %3 = vector.broadcast %cst_1 : f32 to vector<1x128xf32>
    %4 = arith.mulf %2, %3 : vector<1x128xf32>
    %c0_2 = arith.constant 0 : index
    %c0_3 = arith.constant 0 : index
    %5 = vector.load %arg1[%c0_2, %c0_3] : memref<128x128xf32, #tpu.memory_space<vmem>>, vector<128x128xf32>
    %cst_4 = arith.constant dense<0.000000e+00> : vector<1x128xf32>
    %6 = tpu.matmul %4, %5, %cst_4 {dimension_numbers = #tpu.dot_dimension_numbers<[1], [0], [0], [1], [0, 0, 1, 1], [], []>} : vector<1x128xf32>, vector<128x128xf32>, vector<1x128xf32> -> vector<1x128xf32>
    %7 = math.tanh %6 : vector<1x128xf32>
    %8 = vector.broadcast %7 : vector<1x128xf32> to vector<16x128xf32>
    %9 = arith.mulf %0, %8 : vector<16x128xf32>
    %cst_5 = arith.constant dense<0.000000e+00> : vector<16xf32>
    %10 = vector.multi_reduction <add>, %9, %cst_5 [1] : vector<16x128xf32> to vector<16xf32>
    %11 = vector.shape_cast %10 : vector<16xf32> to vector<16x1xf32>
    %cst_6 = arith.constant 0.000000e+00 : f32
    %12 = vector.broadcast %cst_6 : f32 to vector<16x1xf32>
    %13 = arith.subf %12, %11 : vector<16x1xf32>
    %14 = math.exp %13 : vector<16x1xf32>
    %cst_7 = arith.constant 1.000000e+00 : f32
    %15 = vector.broadcast %cst_7 : f32 to vector<16x1xf32>
    %16 = arith.addf %15, %14 : vector<16x1xf32>
    %cst_8 = arith.constant 1.000000e+00 : f32
    %17 = vector.broadcast %cst_8 : f32 to vector<16x1xf32>
    %18 = arith.divf %17, %16 : vector<16x1xf32>
    %19 = vector.broadcast %18 : vector<16x1xf32> to vector<16x128xf32>
    %20 = arith.mulf %19, %0 : vector<16x128xf32>
    %cst_9 = arith.constant dense<0.000000e+00> : vector<128xf32>
    %21 = vector.multi_reduction <add>, %20, %cst_9 [0] : vector<16x128xf32> to vector<128xf32>
    %22 = vector.shape_cast %21 : vector<128xf32> to vector<1x128xf32>
    %c0_10 = arith.constant 0 : index
    %c0_11 = arith.constant 0 : index
    %23 = vector.load %arg2[%c0_10, %c0_11] : memref<1x128xf32, #tpu.memory_space<vmem>>, vector<1x128xf32>
    tpu.vector_store %arg2[%c0_10, %c0_11], %22 {strides = array<i32>} : memref<1x128xf32, #tpu.memory_space<vmem>>, vector<1x128xf32>,
    return
  }
}

</mosaic_0001>

<bundles_post_ra>
// kernel: tpu_custom_call.1
= control target key start
LH: loop header
LB: loop body
LE: loop exit
PB: predicated region body
PF: predicated region fallthrough
CT: control target
= control target key end

     0   :  { %7 = vsyncpa [#allocation3], 0  ;;  %s420_s0 = inlined_call_operand.hbm [shape: f32[16,128], index: 0, kind: input, shape index: {}]   ;;  %s421_s1 = inlined_call_operand.hbm [shape: f32[128,128], index: 1, kind: input, shape index: {}]   ;;  %s422_s2 = inlined_call_operand.hbm [shape: f32[1,128], index: 2, kind: output, shape index: {}]  }
   0x1   :  { %8 = vsyncpa [#allocation6], 0 }
   0x2   :  { %9 = vsyncpa [#allocation4], 0  ;;  %s351_s9 = smov [#allocation2]   ;;  %s279_s13 = scalar_lea.hbm %s420_s0, 256 }
   0x3   :  { %s15_s10 = sshll.u32 %s351_s9, 4  ;;  %p280_p0 = scmp.ne.s32.totalorder %s420_s0, %s279_s13  ;;  %s16_s10 = int_to_ptr.vmem [resolvable:$true] %s15_s10 }
   0x4   :  { %p283_p1 = scmp.lt.u32.totalorder %s279_s13, %s420_s0 }
   0x6   :  { %p285_p2 = pnand %p283_p1, %p280_p0 }
   0x8   :  { %288 = shalt.err (!%p285_p2)
}
   0x9   :  { %s289_s18 = scalar_lea.vmem %s16_s10, 256  ;;  %p294_p4 = scmp.lt.s32.totalorder %s16_s10, %s16_s10 }
   0xa   :  { %p290_p3 = scmp.ne.s32.totalorder %s16_s10, %s289_s18  ;;  %p295_p5 = scmp.lt.s32.totalorder %s289_s18, %s289_s18 }
   0xc   :  { %p296_p6 = por %p295_p5, %p294_p4 }
   0xe   :  { %p297_p7 = pnand %p296_p6, %p290_p3 }
  0x10   :  { %300 = shalt.err (!%p297_p7)
}
  0x11   :  { %s352_s19 = smov 128   ;;  %s353_s20 = smov 8  }
  0x12   :  { %21 = dma.hbm_to_vmem [thread:$0]  %s420_s0, 256, %s16_s10, [#allocation3], %s352_s19, %s352_s19, %s353_s20  }
  0x13   :  { %s354_s23 = smov [#allocation5]   ;;  %s301_s27 = scalar_lea.hbm %s421_s1, 2048 }
  0x14   :  { %s27_s24 = sshll.u32 %s354_s23, 4  ;;  %p302_p8 = scmp.ne.s32.totalorder %s421_s1, %s301_s27  ;;  %s28_s24 = int_to_ptr.vmem [resolvable:$true] %s27_s24 }
  0x15   :  { %p305_p9 = scmp.lt.u32.totalorder %s301_s27, %s421_s1 }
  0x17   :  { %p307_p10 = pnand %p305_p9, %p302_p8 }
  0x19   :  { %310 = shalt.err (!%p307_p10)
}
  0x1a   :  { %s311_s4 = scalar_lea.vmem %s28_s24, 2048  ;;  %p316_p12 = scmp.lt.s32.totalorder %s28_s24, %s28_s24 }
  0x1b   :  { %p312_p11 = scmp.ne.s32.totalorder %s28_s24, %s311_s4  ;;  %p317_p13 = scmp.lt.s32.totalorder %s311_s4, %s311_s4 }
  0x1d   :  { %p318_p0 = por %p317_p13, %p316_p12 }
  0x1f   :  { %p319_p1 = pnand %p318_p0, %p312_p11 }
  0x21   :  { %322 = shalt.err (!%p319_p1)
}
  0x22   :  { %33 = dma.hbm_to_vmem [thread:$0]  %s421_s1, 2048, %s28_s24, [#allocation6], %s352_s19, %s352_s19, %s353_s20  }
  0x23   :  { %345 = dma.done.wait [#allocation3], 256  }
  0x24   :  { %346 = vsyncadd [#allocation3], 4294967040 }
  0x25   :  { %347 = dma.done.wait [#allocation6], 2048  }
  0x26   :  { %348 = vsyncadd [#allocation6], 4294965248  ;;  %v355_v0 = vmov 0.0|0.0   ;;  %vm356_vm0 = vmmov 0   ;;  %v357_v1 = vmov 0.0   ;;  %v50_v2 = vld [vmem:[#allocation5] sm:$0xff]  ;;  %v137_v37 = vlaneseq }
  0x27   :  { %237 = vmatprep.subr.bf16.mxu0 %v355_v0  ;;  %234 = vmatprep.mubr.msk.f32.mxu0 %vm356_vm0, %v357_v1  ;;  %v51_v3 = vld [vmem:[#allocation5 + $0x8] sm:$0xff]  ;;  %v52_v4 = vld [vmem:[#allocation5 + $0x10] sm:$0xff]  ;;  %v53_v6 = vld [vmem:[#allocation5 + $0x18] sm:$0xff]  ;;  %s358_s1 = smov [#allocation7]  }
  0x28   :  { %v238_v5 = vpack.c.bf16 %v51_v3, %v50_v2  ;;  %v241_v7 = vpack.c.bf16 %v53_v6, %v52_v4  ;;  %v54_v8 = vld [vmem:[#allocation5 + $0x20] sm:$0xff]  ;;  %v55_v9 = vld [vmem:[#allocation5 + $0x28] sm:$0xff]  ;;  %v398_v10 = vld [vmem:[#allocation2] sm:$0xff]  ;;  %v138_v39 = vshrl.u32 %v137_v37, 7  ;;  %s175_s6 = sshll.u32 %s358_s1, 4  ;;  %s176_s6 = int_to_ptr.vmem [resolvable:$true] %s175_s6 }
  0x29   :  { %v400_v11 = vld [vmem:[#allocation2 + $0x8] sm:$0xff]  ;;  %v244_v13 = vpack.c.bf16 %v55_v9, %v54_v8  ;;  %v56_v14 = vld [vmem:[#allocation5 + $0x30] sm:$0xff]  ;;  %v58_v19 = vld [vmem:[#allocation5 + $0x40] sm:$0xff]  ;;  %s323_s7 = scalar_lea.vmem %s176_s6, 16  ;;  %s327_s8 = scalar_lea.vmem %s176_s6, 32 }
  0x2a   :  { %239 = vmatpush3.bf16.msra.mxu0 %v238_v5  ;;  %v42_v12 = vadd.f32 %v400_v11, %v398_v10  ;;  %v57_v15 = vld [vmem:[#allocation5 + $0x38] sm:$0xff]  ;;  %v59_v20 = vld [vmem:[#allocation5 + $0x48] sm:$0xff]  ;;  %v60_v23 = vld [vmem:[#allocation5 + $0x50] sm:$0xff]  ;;  %v139_v40 = vsub.s32 0, %v138_v39  ;;  %p324_p2 = scmp.ne.s32.totalorder %s176_s6, %s323_s7  ;;  %p328_p3 = scmp.lt.s32.totalorder %s176_s6, %s176_s6 }
  0x2b   :  { %240 = vmatprep.subr.bf16.mxu0 %v355_v0  ;;  %v247_v18 = vpack.c.bf16 %v57_v15, %v56_v14  ;;  %v250_v22 = vpack.c.bf16 %v59_v20, %v58_v19  ;;  %v61_v24 = vld [vmem:[#allocation5 + $0x58] sm:$0xff]  ;;  %v62_v27 = vld [vmem:[#allocation5 + $0x60] sm:$0xff]  ;;  %v63_v28 = vld [vmem:[#allocation5 + $0x68] sm:$0xff]  ;;  %p329_p4 = scmp.lt.s32.totalorder %s327_s8, %s323_s7 }
  0x2c   :  { %v43_v16 = vrot.slane %v42_v12, 4  ;;  %v253_v26 = vpack.c.bf16 %v61_v24, %v60_v23  ;;  %v256_v30 = vpack.c.bf16 %v63_v28, %v62_v27  ;;  %v64_v31 = vld [vmem:[#allocation5 + $0x70] sm:$0xff]  ;;  %v65_v32 = vld [vmem:[#allocation5 + $0x78] sm:$0xff] }
  0x2d   :  { %v259_v34 = vpack.c.bf16 %v65_v32, %v64_v31  ;;  %p330_p5 = por %p329_p4, %p328_p3 }
  0x2e   :  { %242 = vmatpush3.bf16.msra.mxu0 %v241_v7  ;;  %v44_v17 = vadd.f32 %v43_v16, %v42_v12 }
  0x2f   :  { %243 = vmatprep.subr.bf16.mxu0 %v355_v0  ;;  %p331_p6 = pnand %p330_p5, %p324_p2 }
  0x30   :  { %v45_v21 = vrot.slane %v44_v17, 2 }
  0x32   :  { %245 = vmatpush3.bf16.msra.mxu0 %v244_v13  ;;  %v46_v25 = vadd.f32 %v45_v21, %v44_v17 }
  0x33   :  { %246 = vmatprep.subr.bf16.mxu0 %v355_v0 }
  0x34   :  { %v47_v29 = vrot.slane %v46_v25, 1 }
  0x36   :  { %248 = vmatpush3.bf16.msra.mxu0 %v247_v18  ;;  %v48_v33 = vadd.f32 %v47_v29, %v46_v25 }
  0x37   :  { %249 = vmatprep.subr.bf16.mxu0 %v355_v0 }
  0x38   :  { %v49_v35 = vmul.f32 0.0625, %v48_v33 }
  0x3a   :  { %251 = vmatpush3.bf16.msra.mxu0 %v250_v22 }
  0x3b   :  { %252 = vmatprep.subr.bf16.mxu0 %v355_v0 }
  0x3e   :  { %254 = vmatpush3.bf16.msra.mxu0 %v253_v26 }
  0x3f   :  { %255 = vmatprep.subr.bf16.mxu0 %v355_v0 }
  0x42   :  { %257 = vmatpush3.bf16.msra.mxu0 %v256_v30 }
  0x43   :  { %258 = vmatprep.subr.bf16.mxu0 %v355_v0 }
  0x46   :  { %260 = vmatpush3.bf16.msra.mxu0 %v259_v34 }
  0x49   :  { %235 = vmatmul.mubr.f32.vlgmr.msra.gmra.mrb[0].mxu0 %v49_v35 }
 0x11c   :  { %v132_v36 = vpop.f32.mrb[0].mxu0 }
 0x11d   :  { %269 = vtanh.f32 %v132_v36  ;;  %v236_v38 = vpop.f32.mrb[1].mxu0 }
 0x127   :  { %v270_v41 = vpop.eup %269 }
 0x128   :  { %v140_v42 = vrot.slane %v270_v41, %v139_v40 }
 0x12a   :  { %v141_v43 = vmul.f32 %v140_v42, %v398_v10  ;;  %v142_v44 = vmul.f32 %v140_v42, %v400_v11 }
 0x12c   :  { %143 = vadd.xlane.f32.xlu0 %v141_v43 }
 0x130   :  { %145 = vadd.xlane.f32.xlu0 %v142_v44 }
 0x1b9   :  { %v144_v45 = vpop.xlane.xlu0 %143 }
 0x1ba   :  { %v147_v46 = vsub.f32 0.0, %v144_v45 }
 0x1bc   :  { %v149_v47 = vmul.f32 1.442695, %v147_v46 }
 0x1bd   :  { %v146_v48 = vpop.xlane.xlu0 %145 }
 0x1be   :  { %271 = vpow2.f32 %v149_v47  ;;  %v148_v49 = vsub.f32 0.0, %v146_v48 }
 0x1c0   :  { %v151_v50 = vmul.f32 1.442695, %v148_v49 }
 0x1c2   :  { %273 = vpow2.f32 %v151_v50 }
 0x1c8   :  { %v272_v51 = vpop.eup %271 }
 0x1c9   :  { %v153_v52 = vadd.f32 1.0, %v272_v51 }
 0x1cb   :  { %275 = vrcp.f32 %v153_v52 }
 0x1cc   :  { %v274_v53 = vpop.eup %273 }
 0x1cd   :  { %v154_v54 = vadd.f32 1.0, %v274_v53 }
 0x1cf   :  { %277 = vrcp.f32 %v154_v54 }
 0x1d5   :  { %v276_v55 = vpop.eup %275 }
 0x1d6   :  { %v159_v57 = vmul.f32 %v276_v55, %v398_v10 }
 0x1d9   :  { %v278_v56 = vpop.eup %277 }
 0x1da   :  { %v160_v58 = vmul.f32 %v278_v56, %v400_v11 }
 0x1dc   :  { %v161_v59 = vadd.f32 %v160_v58, %v159_v57 }
 0x1de   :  { %v162_v60 = vrot.slane %v161_v59, 4 }
 0x1e0   :  { %v163_v61 = vadd.f32 %v162_v60, %v161_v59 }
 0x1e2   :  { %v164_v62 = vrot.slane %v163_v61, 2 }
 0x1e4   :  { %v165_v63 = vadd.f32 %v164_v62, %v163_v61 }
 0x1e6   :  { %v166_v0 = vrot.slane %v165_v63, 1 }
 0x1e8   :  { %v167_v1 = vadd.f32 %v166_v0, %v165_v63 }
 0x1ea   :  { %168 = vst [vmem:[#allocation7] sm:$0x1] %v167_v1 }
 0x1eb   :  { %334 = shalt.err (!%p331_p6)
}
 0x1ec   :  { %s335_s11 = scalar_lea.hbm %s422_s2, 16 }
 0x1ed   :  { %p336_p7 = scmp.ne.s32.totalorder %s422_s2, %s335_s11  ;;  %p339_p8 = scmp.lt.u32.totalorder %s335_s11, %s422_s2 }
 0x1ef   :  { %p341_p9 = pnand %p339_p8, %p336_p7 }
 0x1f1   :  { %344 = shalt.err (!%p341_p9)
}
 0x1f2   :  { %178 = dma.vmem_to_hbm [thread:$0]  %s176_s6, 16, %s422_s2, [#allocation4]  }
 0x1f3   :  { %349 = dma.done.wait [#allocation4], 16  }
 0x1f4   :  { %350 = vsyncadd [#allocation4], 4294967280 }
 0x1f5   :  { %182 = vsyncpa [#allocation3], 1 }
 0x1f6   :  { %183 = vsyncpa [#allocation6], 1 }
 0x1f7   :  { %184 = vsyncpa [#allocation4], 1 }

</bundles_post_ra>
